<compile_context>
chip_gen: v7x
topology: tpu7x:2x2x1
jax: 0.10.0
libtpu: 0.0.40
codegen_flags: <defaults>
</compile_context>

<pallas_src>
import jax
import jax.numpy as jnp
from jax.experimental import pallas as pl
from jax.experimental.pallas import tpu as pltpu


def _pool_att_ff_kernel(n_ref,                 # (TB, 1) int32   valid-window counts
                        x_ref,                 # (TB, T, D)  bf16 (or f32)
                        w1_ref, b1_ref,        # (D, H) bf16, (1, H) f32
                        w2_ref, b2_ref,        # (1, H) f32,  (1, 1) f32
                        w3_ref, b3_ref,        # (D, O) bf16, (1, O) f32
                        o_ref):                # (TB, O) f32
    x = x_ref[...]                             # (TB, T, D)
    TB, T, D = x.shape
    H = w1_ref.shape[1]

    # ---- feed-forward attention scores --------------------------------
    # linear1 on the MXU: (TB*T, D) @ (D, H). T is padded to a multiple of 16
    # wrapper-side, so this collapse of the leading dims is layout-free.
    h = jnp.dot(x.reshape(TB * T, D), w1_ref[...],
                preferred_element_type=jnp.float32) + b1_ref[...]
    h = jnp.maximum(h, 0.0)                    # ReLU, f32
    # TODO(synk): nn.Dropout is identity at inference; training-mode drop not implemented.

    # linear2 is an N=1, K=H matmul -> keep it off the MXU: VPU mul + lane reduce (f32)
    att = jnp.sum(h.reshape(TB, T, H) * w2_ref[...], axis=-1) + b2_ref[...]  # (TB, T)

    # ---- mask invalid windows (finite -> no NaN for all-masked rows) ----
    n = n_ref[...]                                              # (TB, 1)
    t_idx = jax.lax.broadcasted_iota(jnp.int32, att.shape, 1)   # (TB, T)
    att = jnp.where(t_idx < n, att, jnp.float32(-3e38))

    # ---- stable softmax numerator / denominator -------------------------
    m = jnp.max(att, axis=1, keepdims=True)                     # (TB, 1)
    e = jnp.exp(att - m)                                        # (TB, T) unnormalized
    s = jnp.sum(e, axis=1, keepdims=True)                       # (TB, 1)

    # ---- attention pooling on the MXU: (TB,1,T) @ (TB,T,D) --------------
    # Batched M=1 matmul; avoids materializing a (TB,T,D) VPU temporary.
    pooled = jnp.einsum("bqt,btd->bqd",
                        e[:, None, :].astype(x.dtype), x,
                        preferred_element_type=jnp.float32)[:, 0, :]   # (TB, D) f32
    pooled = pooled / s                        # exact 1/s, folded post-pool

    # ---- linear3 on the MXU ---------------------------------------------
    o_ref[...] = jnp.dot(pooled.astype(w3_ref.dtype), w3_ref[...],
                         preferred_element_type=jnp.float32) + b3_ref[...]


def _vmem_limit_bytes():
    """Per-generation VMEM limit: ~3/4 of physical VMEM (48 MiB on 64 MiB v7x
    parts, 96 MiB on 128 MiB v5e/v6e parts), conservative fallback if unknown."""
    try:
        phys = int(getattr(pltpu.get_tpu_info(), "vmem_capacity_bytes"))
    except Exception:
        phys = 64 * 1024 * 1024                 # v7x per-TC physical VMEM (safe everywhere)
    return max(32 * 1024 * 1024, (phys * 3) // 4)


def _auto_block_b(B, T, D, H, O, x_bytes, vmem_limit):
    """Batch-rows per grid step, sized against the full per-step VMEM footprint."""
    if B <= 8:
        return B
    # Live bytes per batch row inside one grid step:
    per_row = (2 * T * D * x_bytes             # x tile, 2 pipeline buffers
               + T * H * 4                     # h after linear1 (f32)
               + 8 * T * 4                     # att / e / iota / mask f32 temps
               + 2 * O * 4                     # output tile, 2 pipeline buffers
               + 2 * D * 4)                    # pooled row + slack
    # Weights/biases have constant index maps but still get 2 VMEM buffers each.
    fixed = 2 * ((D * H + D * O) * x_bytes + (H + O + 2) * 4)
    budget = (vmem_limit * 3) // 5 - fixed     # leave ~40% headroom for compiler scratch
    tb = max(1, budget // max(per_row, 1))
    if tb >= B:
        block_b = B
    else:
        block_b = max(8, (tb // 8) * 8)        # sublane rule: multiple of 8 when < B
    # Keep >=2 (>=4 for larger B) grid steps: the "parallel" batch axis only
    # feeds both v7x TensorCores with >=2 iterations, and >=2 steps lets the x
    # DMA pipeline against compute on all generations.
    if B >= 16:
        min_steps = 4 if B >= 32 else 2
        cap = max(8, (pl.cdiv(B, min_steps) // 8) * 8)
        block_b = min(block_b, cap)
    return int(min(block_b, B))


def pool_att_ff(x, n_wins, w1, b1, w2, b2, w3, b3, *, block_b=None,
                mxu_dtype=jnp.bfloat16):
    """x: (B, T, D) f32; n_wins: (B,) int; returns (B, O) f32."""
    B, T, D = x.shape
    H = w1.shape[1]
    O = w3.shape[1]

    # Pad T to a multiple of 16 so the in-kernel (TB,T,D)->(TB*T,D) collapse is
    # layout-free for packed bf16; padded windows are removed by the length mask.
    T_pad = ((T + 15) // 16) * 16
    if T_pad != T:
        x = jnp.pad(x, ((0, 0), (0, T_pad - T), (0, 0)))
        T = T_pad

    # MXU-facing operands in bf16 (halves the dominant HBM x stream and the
    # VMEM tile); everything that feeds the VPU/softmax stays f32.
    x_k = x.astype(mxu_dtype)
    w1_k = w1.astype(mxu_dtype)
    w3_k = w3.astype(mxu_dtype)
    b1_k = b1.astype(jnp.float32)
    w2_k = w2.astype(jnp.float32)
    b2_k = b2.astype(jnp.float32)
    b3_k = b3.astype(jnp.float32)
    n2 = n_wins.reshape(B, 1).astype(jnp.int32)

    vmem_limit = _vmem_limit_bytes()
    if block_b is None:
        block_b = _auto_block_b(B, T, D, H, O,
                                x_bytes=jnp.dtype(mxu_dtype).itemsize,
                                vmem_limit=vmem_limit)
    grid = (pl.cdiv(B, block_b),)

    return pl.pallas_call(
        _pool_att_ff_kernel,
        out_shape=jax.ShapeDtypeStruct((B, O), jnp.float32),
        grid=grid,
        in_specs=[
            pl.BlockSpec((block_b, 1),    lambda b: (b, 0)),          # n_wins
            pl.BlockSpec((block_b, T, D), lambda b: (b, 0, 0)),       # x
            pl.BlockSpec((D, H),          lambda b: (0, 0)),          # w1
            pl.BlockSpec((1, H),          lambda b: (0, 0)),          # b1
            pl.BlockSpec((1, H),          lambda b: (0, 0)),          # w2
            pl.BlockSpec((1, 1),          lambda b: (0, 0)),          # b2
            pl.BlockSpec((D, O),          lambda b: (0, 0)),          # w3
            pl.BlockSpec((1, O),          lambda b: (0, 0)),          # b3
        ],
        out_specs=pl.BlockSpec((block_b, O), lambda b: (b, 0)),
        compiler_params=pltpu.CompilerParams(
            dimension_semantics=("parallel",),            # batch rows are independent
            vmem_limit_bytes=int(vmem_limit),
        ),
    )(n2, x_k, w1_k, b1_k, w2_k, b2_k, w3_k, b3_k)


def pool_att_ff_reference(x, n_wins, w1, b1, w2, b2, w3, b3):
    """Pure-JAX f32 reference mirroring the PyTorch forward (eval mode)."""
    B, T, D = x.shape
    h = jnp.maximum(jnp.einsum("btd,dh->bth", x, w1) + b1, 0.0)       # (B, T, H)
    att = jnp.einsum("bth,h->bt", h, w2[0]) + b2[0, 0]                # (B, T)
    mask = jnp.arange(T)[None, :] < n_wins[:, None]
    att = jnp.where(mask, att, -jnp.inf)
    att = jax.nn.softmax(att, axis=1)
    pooled = jnp.einsum("bt,btd->bd", att, x)                         # (B, D)
    return pooled @ w3 + b3


if __name__ == "__main__":
    B, T, D, H, O = 4, 16, 32, 16, 8

    key = jax.random.PRNGKey(0)
    ks = jax.random.split(key, 7)

    x = jax.random.normal(ks[0], (B, T, D), dtype=jnp.float32)
    n_wins = jnp.array([T, T // 2, 3, T], dtype=jnp.int32)

    # nn.Linear(D, H): weight (H, D) -> stored transposed (D, H); bias (H,)
    w1 = jax.random.normal(ks[1], (D, H), dtype=jnp.float32) * 0.1
    b1 = jax.random.normal(ks[2], (1, H), dtype=jnp.float32) * 0.1
    # nn.Linear(H, 1): weight (1, H) stored as-is; bias (1,)
    w2 = jax.random.normal(ks[3], (1, H), dtype=jnp.float32) * 0.1
    b2 = jax.random.normal(ks[4], (1, 1), dtype=jnp.float32) * 0.1
    # nn.Linear(D, O): weight (O, D) -> stored transposed (D, O); bias (O,)
    w3 = jax.random.normal(ks[5], (D, O), dtype=jnp.float32) * 0.1
    b3 = jax.random.normal(ks[6], (1, O), dtype=jnp.float32) * 0.1

    out = pool_att_ff(x, n_wins, w1, b1, w2, b2, w3, b3)
    out = jax.block_until_ready(out)

    ref = pool_att_ff_reference(x, n_wins, w1, b1, w2, b2, w3, b3)
    assert out.shape == (B, O)
    # bf16 MXU path vs f32 reference -> loose-but-safe tolerance.
    assert jnp.allclose(out, ref, atol=5e-2, rtol=5e-2), (out, ref)

    print("KERNEL_OK")
</pallas_src>

<mosaic_0001>
module attributes {stable_mosaic.version = 11 : i64} {
  func.func @_pool_att_ff_kernel(%arg0: i32, %arg1: memref<4x1xi32, #tpu.memory_space<vmem>>, %arg2: memref<4x16x32xbf16, #tpu.memory_space<vmem>>, %arg3: memref<32x16xbf16, #tpu.memory_space<vmem>>, %arg4: memref<1x16xf32, #tpu.memory_space<vmem>>, %arg5: memref<1x16xf32, #tpu.memory_space<vmem>>, %arg6: memref<1x1xf32, #tpu.memory_space<vmem>>, %arg7: memref<32x8xbf16, #tpu.memory_space<vmem>>, %arg8: memref<1x8xf32, #tpu.memory_space<vmem>>, %arg9: memref<4x8xf32, #tpu.memory_space<vmem>>) attributes {dimension_semantics = [#tpu.dimension_semantics<parallel>], iteration_bounds = array<i64: 1>, scalar_prefetch = 0 : i64, scratch_operands = 0 : i64, tpu.core_type = #tpu.core_type<tc>, window_params = [{transform_indices = @transform_0, window_bounds = array<i64: 4, 1>}, {transform_indices = @transform_1, window_bounds = array<i64: 4, 16, 32>}, {pipeline_mode = #tpu.pipeline_mode<synchronous>, transform_indices = @transform_2, window_bounds = array<i64: 32, 16>}, {pipeline_mode = #tpu.pipeline_mode<synchronous>, transform_indices = @transform_3, window_bounds = array<i64: 1, 16>}, {pipeline_mode = #tpu.pipeline_mode<synchronous>, transform_indices = @transform_4, window_bounds = array<i64: 1, 16>}, {pipeline_mode = #tpu.pipeline_mode<synchronous>, transform_indices = @transform_5, window_bounds = array<i64: 1, 1>}, {pipeline_mode = #tpu.pipeline_mode<synchronous>, transform_indices = @transform_6, window_bounds = array<i64: 32, 8>}, {pipeline_mode = #tpu.pipeline_mode<synchronous>, transform_indices = @transform_7, window_bounds = array<i64: 1, 8>}, {transform_indices = @transform_8, window_bounds = array<i64: 4, 8>}]} {
    %c0 = arith.constant 0 : index
    %c0_0 = arith.constant 0 : index
    %c0_1 = arith.constant 0 : index
    %0 = vector.load %arg2[%c0, %c0_0, %c0_1] : memref<4x16x32xbf16, #tpu.memory_space<vmem>>, vector<4x16x32xbf16>
    %1 = vector.shape_cast %0 : vector<4x16x32xbf16> to vector<64x32xbf16>
    %c0_2 = arith.constant 0 : index
    %c0_3 = arith.constant 0 : index
    %2 = vector.load %arg3[%c0_2, %c0_3] : memref<32x16xbf16, #tpu.memory_space<vmem>>, vector<32x16xbf16>
    %cst = arith.constant dense<0.000000e+00> : vector<64x16xf32>
    %3 = tpu.matmul %1, %2, %cst {dimension_numbers = #tpu.dot_dimension_numbers<[1], [0], [0], [1], [0, 0, 1, 1], [], []>} : vector<64x32xbf16>, vector<32x16xbf16>, vector<64x16xf32> -> vector<64x16xf32>
    %c0_4 = arith.constant 0 : index
    %c0_5 = arith.constant 0 : index
    %4 = vector.load %arg4[%c0_4, %c0_5] : memref<1x16xf32, #tpu.memory_space<vmem>>, vector<1x16xf32>
    %5 = vector.broadcast %4 : vector<1x16xf32> to vector<64x16xf32>
    %6 = arith.addf %3, %5 : vector<64x16xf32>
    %cst_6 = arith.constant 0.000000e+00 : f32
    %7 = vector.broadcast %cst_6 : f32 to vector<64x16xf32>
    %8 = arith.maximumf %6, %7 : vector<64x16xf32>
    %9 = vector.shape_cast %8 : vector<64x16xf32> to vector<4x16x16xf32>
    %c0_7 = arith.constant 0 : index
    %c0_8 = arith.constant 0 : index
    %10 = vector.load %arg5[%c0_7, %c0_8] : memref<1x16xf32, #tpu.memory_space<vmem>>, vector<1x16xf32>
    %11 = vector.shape_cast %10 : vector<1x16xf32> to vector<1x1x16xf32>
    %12 = vector.broadcast %11 : vector<1x1x16xf32> to vector<4x16x16xf32>
    %13 = arith.mulf %9, %12 : vector<4x16x16xf32>
    %cst_9 = arith.constant dense<0.000000e+00> : vector<4x16xf32>
    %14 = vector.multi_reduction <add>, %13, %cst_9 [2] : vector<4x16x16xf32> to vector<4x16xf32>
    %c0_10 = arith.constant 0 : index
    %c0_11 = arith.constant 0 : index
    %15 = vector.load %arg6[%c0_10, %c0_11] : memref<1x1xf32, #tpu.memory_space<vmem>>, vector<1x1xf32>
    %16 = vector.broadcast %15 : vector<1x1xf32> to vector<4x16xf32>
    %17 = arith.addf %14, %16 : vector<4x16xf32>
    %c0_12 = arith.constant 0 : index
    %c0_13 = arith.constant 0 : index
    %18 = vector.load %arg1[%c0_12, %c0_13] : memref<4x1xi32, #tpu.memory_space<vmem>>, vector<4x1xi32>
    %19 = tpu.iota {dimensions = array<i32: 1>} : vector<4x16xi32>
    %20 = vector.broadcast %18 : vector<4x1xi32> to vector<4x16xi32>
    %21 = arith.cmpi slt, %19, %20 : vector<4x16xi32>
    %cst_14 = arith.constant -3.000000e+38 : f32
    %22 = vector.broadcast %cst_14 : f32 to vector<4x16xf32>
    %23 = arith.select %21, %17, %22 : vector<4x16xi1>, vector<4x16xf32>
    %cst_15 = arith.constant dense<0xFF800000> : vector<4xf32>
    %24 = vector.multi_reduction <maximumf>, %23, %cst_15 [1] : vector<4x16xf32> to vector<4xf32>
    %25 = vector.shape_cast %24 : vector<4xf32> to vector<4x1xf32>
    %26 = vector.broadcast %25 : vector<4x1xf32> to vector<4x16xf32>
    %27 = arith.subf %23, %26 : vector<4x16xf32>
    %28 = math.exp %27 : vector<4x16xf32>
    %cst_16 = arith.constant dense<0.000000e+00> : vector<4xf32>
    %29 = vector.multi_reduction <add>, %28, %cst_16 [1] : vector<4x16xf32> to vector<4xf32>
    %30 = vector.shape_cast %29 : vector<4xf32> to vector<4x1xf32>
    %31 = vector.shape_cast %28 : vector<4x16xf32> to vector<4x1x16xf32>
    %32 = arith.truncf %31 : vector<4x1x16xf32> to vector<4x1x16xbf16>
    "tpu.trace_start"() <{level = 10 : i32, message = "bqt,btd->bqd"}> : () -> ()
    %cst_17 = arith.constant dense<0.000000e+00> : vector<4x1x32xf32>
    %33 = tpu.matmul %32, %0, %cst_17 {dimension_numbers = #tpu.dot_dimension_numbers<[2], [1], [1], [2], [0, 0, 0, 1, 1, 2], [0], [0]>} : vector<4x1x16xbf16>, vector<4x16x32xbf16>, vector<4x1x32xf32> -> vector<4x1x32xf32>
    "tpu.trace_stop"() : () -> ()
    %34 = vector.shape_cast %33 : vector<4x1x32xf32> to vector<4x32xf32>
    %35 = vector.broadcast %30 : vector<4x1xf32> to vector<4x32xf32>
    %36 = arith.divf %34, %35 : vector<4x32xf32>
    %37 = arith.truncf %36 : vector<4x32xf32> to vector<4x32xbf16>
    %c0_18 = arith.constant 0 : index
    %c0_19 = arith.constant 0 : index
    %38 = vector.load %arg7[%c0_18, %c0_19] : memref<32x8xbf16, #tpu.memory_space<vmem>>, vector<32x8xbf16>
    %cst_20 = arith.constant dense<0.000000e+00> : vector<4x8xf32>
    %39 = tpu.matmul %37, %38, %cst_20 {dimension_numbers = #tpu.dot_dimension_numbers<[1], [0], [0], [1], [0, 0, 1, 1], [], []>} : vector<4x32xbf16>, vector<32x8xbf16>, vector<4x8xf32> -> vector<4x8xf32>
    %c0_21 = arith.constant 0 : index
    %c0_22 = arith.constant 0 : index
    %40 = vector.load %arg8[%c0_21, %c0_22] : memref<1x8xf32, #tpu.memory_space<vmem>>, vector<1x8xf32>
    %41 = vector.broadcast %40 : vector<1x8xf32> to vector<4x8xf32>
    %42 = arith.addf %39, %41 : vector<4x8xf32>
    %c0_23 = arith.constant 0 : index
    %c0_24 = arith.constant 0 : index
    %43 = vector.load %arg9[%c0_23, %c0_24] : memref<4x8xf32, #tpu.memory_space<vmem>>, vector<4x8xf32>
    tpu.vector_store %arg9[%c0_23, %c0_24], %42 {strides = array<i32>} : memref<4x8xf32, #tpu.memory_space<vmem>>, vector<4x8xf32>,
    return
  }
  func.func @transform_0(%arg0: i32) -> (i32, i32) {
    %c0_i32 = arith.constant 0 : i32
    %c0_i32_0 = arith.constant 0 : i32
    return %arg0, %c0_i32 : i32, i32
  }
  func.func @transform_1(%arg0: i32) -> (i32, i32, i32) {
    %c0_i32 = arith.constant 0 : i32
    %c0_i32_0 = arith.constant 0 : i32
    %c0_i32_1 = arith.constant 0 : i32
    return %arg0, %c0_i32, %c0_i32_0 : i32, i32, i32
  }
  func.func @transform_2(%arg0: i32) -> (i32, i32) {
    %c0_i32 = arith.constant 0 : i32
    %c0_i32_0 = arith.constant 0 : i32
    %c0_i32_1 = arith.constant 0 : i32
    return %c0_i32, %c0_i32_0 : i32, i32
  }
  func.func @transform_3(%arg0: i32) -> (i32, i32) {
    %c0_i32 = arith.constant 0 : i32
    %c0_i32_0 = arith.constant 0 : i32
    %c0_i32_1 = arith.constant 0 : i32
    return %c0_i32, %c0_i32_0 : i32, i32
  }
  func.func @transform_4(%arg0: i32) -> (i32, i32) {
    %c0_i32 = arith.constant 0 : i32
    %c0_i32_0 = arith.constant 0 : i32
    %c0_i32_1 = arith.constant 0 : i32
    return %c0_i32, %c0_i32_0 : i32, i32
  }
  func.func @transform_5(%arg0: i32) -> (i32, i32) {
    %c0_i32 = arith.constant 0 : i32
    %c0_i32_0 = arith.constant 0 : i32
    %c0_i32_1 = arith.constant 0 : i32
    return %c0_i32, %c0_i32_0 : i32, i32
  }
  func.func @transform_6(%arg0: i32) -> (i32, i32) {
    %c0_i32 = arith.constant 0 : i32
    %c0_i32_0 = arith.constant 0 : i32
    %c0_i32_1 = arith.constant 0 : i32
    return %c0_i32, %c0_i32_0 : i32, i32
  }
  func.func @transform_7(%arg0: i32) -> (i32, i32) {
    %c0_i32 = arith.constant 0 : i32
    %c0_i32_0 = arith.constant 0 : i32
    %c0_i32_1 = arith.constant 0 : i32
    return %c0_i32, %c0_i32_0 : i32, i32
  }
  func.func @transform_8(%arg0: i32) -> (i32, i32) {
    %c0_i32 = arith.constant 0 : i32
    %c0_i32_0 = arith.constant 0 : i32
    return %arg0, %c0_i32 : i32, i32
  }
}

</mosaic_0001>

<bundles_post_ra>
// kernel: tpu_custom_call.1
= control target key start
LH: loop header
LB: loop body
LE: loop exit
PB: predicated region body
PF: predicated region fallthrough
CT: control target
= control target key end

     0   :  { %s907_s0 = inlined_call_operand.vmem [shape: s32[4,1], index: 0, kind: input, shape index: {}]   ;;  %s908_s1 = inlined_call_operand.vmem [shape: bf16[4,16,32], index: 1, kind: input, shape index: {}]   ;;  %s909_s2 = inlined_call_operand.vmem [shape: bf16[32,16], index: 2, kind: input, shape index: {}]   ;;  %s910_s3 = inlined_call_operand.vmem [shape: f32[1,16], index: 3, kind: input, shape index: {}]   ;;  %s911_s4 = inlined_call_operand.vmem [shape: f32[1,16], index: 4, kind: input, shape index: {}]   ;;  %s912_s5 = inlined_call_operand.<no memory space> [shape: f32[1,1], index: 5, kind: input, shape index: {}]   ;;  %s913_s6 = inlined_call_operand.vmem [shape: bf16[32,8], index: 6, kind: input, shape index: {}]   ;;  %s914_s7 = inlined_call_operand.vmem [shape: f32[1,8], index: 7, kind: input, shape index: {}]   ;;  %s915_s8 = inlined_call_operand.hbm [shape: f32[4,8], index: 8, kind: output, shape index: {}]  }
   0x1   :  { %v13_v0 = vstv %s912_s5 }
   0x2   :  { %14 = vst [vmem:[#allocation2] sm:$0x1] %v13_v0 }
   0x3   :  { %v714_v1 = vld [vmem:[%s909_s2] sm:$0xff]   ;;  %v715_v2 = vld [vmem:[%s909_s2 + $0x8] sm:$0xff]   ;;  %vm84_vm0 = vcmask 261120   ;;  %v830_v5 = vld [vmem:[%s908_s1 + $0x10] sm:$0xff]  }
   0x4   :  { %663 = vmatprep.subr.bf16.mxu0 %v714_v1  ;;  %v818_v3 = vld [vmem:[%s908_s1] sm:$0xff]   ;;  %v825_v4 = vld [vmem:[%s908_s1 + $0x8] sm:$0xff]  }
   0x5   :  { %664 = vmatpush3.bf16.msra.mxu0 %v714_v1  ;;  %667 = vmatprep.mubr.msk.bf16.mxu0 %vm84_vm0, %v818_v3 }
   0x6   :  { %665 = vmatprep.subr.bf16.mxu0 %v715_v2 }
   0x9   :  { %666 = vmatpush3.bf16.msra.mxu0 %v715_v2 }
   0xa   :  { %15 = vsyncpa [#allocation4], 0  ;;  %v839_v6 = vld [vmem:[%s908_s1 + $0x18] sm:$0xff]   ;;  %v756_v7 = vmov 0   ;;  %v625_v8 = vld [vmem:[%s910_s3] ss:$0 sm:$0xff]  ;;  %v229_v55 = vlaneseq }
   0xb   :  { %712 = vset.pattern.permute.xlu0 %v756_v7  ;;  %713 = vset.pattern.permute.xlu1 %v756_v7  ;;  %v636_v14 = vld [vmem:[%s911_s4] ss:$0 sm:$0xff]  ;;  %vm185_vm1 = vcmask 130048   ;;  %vm252_vm2 = vcmask 130112   ;;  %vm281_vm3 = vcmask 1041409   ;;  %vm283_vm4 = vcmask 1042434  }
   0xc   :  { %668 = vmatmul.mubr.msk.bf16.vlgmr.msra.gmra.mrb[0].mxu0 %vm84_vm0, %v825_v4  ;;  %v228_v50 = vld [vmem:[%s907_s0] sm:$0xf]  ;;  %v230_v58 = vand.u32 127, %v229_v55  ;;  %v244_v60 = vshrl.u32 %v229_v55, 7  ;;  %vm285_vm5 = vcmask 1043459   ;;  %vm289_vm7 = vcmask 125952  }
   0xd   :  { %671 = vmatprep.mubr.msk.bf16.mxu0 %vm84_vm0, %v830_v5  ;;  %v637_v51 = vld [vmem:[#allocation2] ss:$0 sm:$0xff]  ;;  %vm758_vm8 = vmmov 0   ;;  %s760_s24 = smov [#allocation3]   ;;  %vm609_vm9 = vcmask 60416  }
   0xe   :  { %v247_v61 = vadd.s32 4294967288, %v230_v58  ;;  %v245_v0 = vsub.s32 %v230_v58, %v244_v60  ;;  %s617_s25 = sshll.u32 %s760_s24, 4  ;;  %s618_s25 = int_to_ptr.vmem [resolvable:$true] %s617_s25 }
   0xf   :  { %s732_s26 = scalar_lea.vmem %s618_s25, 64  ;;  %p737_p1 = scmp.lt.s32.totalorder %s618_s25, %s618_s25 }
  0x10   :  { %v250_v1 = vsub.s32 %v247_v61, %v244_v60  ;;  %p733_p0 = scmp.ne.s32.totalorder %s618_s25, %s732_s26  ;;  %p738_p2 = scmp.lt.s32.totalorder %s732_s26, %s732_s26 }
  0x12   :  { %p739_p3 = por %p738_p2, %p737_p1 }
  0x14   :  { %672 = vmatmul.mubr.msk.bf16.gmra.mrb[4].mxu0 %vm84_vm0, %v839_v6  ;;  %p740_p4 = pnand %p739_p3, %p733_p0 }
  0xdf   :  { %v669_v9 = vpop.f32.mrb[0].mxu0 }
  0xe0   :  { %v140_v10 = vadd.f32 %v669_v9, %v625_v8  ;;  %v131_v11 = vpop.f32.mrb[1].mxu0 }
  0xe1   :  { %v132_v12 = vadd.f32 %v625_v8, %v131_v11  ;;  %v670_v13 = vpop.f32.mrb[2].mxu0 }
  0xe2   :  { %v164_v15 = vmax.f32 %v140_v10, 0.0  ;;  %v143_v16 = vadd.f32 %v670_v13, %v625_v8  ;;  %v134_v17 = vpop.f32.mrb[3].mxu0 }
  0xe3   :  { %v162_v18 = vmax.f32 %v132_v12, 0.0  ;;  %v135_v19 = vadd.f32 %v625_v8, %v134_v17 }
  0xe4   :  { %v165_v20 = vmax.f32 %v143_v16, 0.0  ;;  %v179_v21 = vmul.f32 %v636_v14, %v164_v15 }
  0xe5   :  { %v163_v22 = vmax.f32 %v135_v19, 0.0  ;;  %v177_v23 = vmul.f32 %v636_v14, %v162_v18 }
  0xe6   :  { %v192_v24 = vsel %vm185_vm1, %v179_v21, 0.0  ;;  %v180_v25 = vmul.f32 %v636_v14, %v165_v20 }
  0xe7   :  { %193 = vadd.xlane.f32.xlu1 %v192_v24  ;;  %v673_v26 = vpop.f32.mrb[4].mxu0  ;;  %v186_v27 = vsel %vm185_vm1, %v177_v23, 0.0  ;;  %v178_v28 = vmul.f32 %v636_v14, %v163_v22 }
  0xe8   :  { %v156_v29 = vadd.f32 %v673_v26, %v625_v8  ;;  %v147_v30 = vpop.f32.mrb[5].mxu0  ;;  %187 = vadd.xlane.f32.xlu0 %v186_v27  ;;  %v195_v36 = vsel %vm185_vm1, %v180_v25, 0.0 }
  0xe9   :  { %v148_v31 = vadd.f32 %v625_v8, %v147_v30  ;;  %v674_v32 = vpop.f32.mrb[6].mxu0  ;;  %v189_v39 = vsel %vm185_vm1, %v178_v28, 0.0 }
  0xea   :  { %v168_v33 = vmax.f32 %v156_v29, 0.0  ;;  %v159_v34 = vadd.f32 %v674_v32, %v625_v8  ;;  %v150_v35 = vpop.f32.mrb[7].mxu0 }
  0xeb   :  { %v166_v37 = vmax.f32 %v148_v31, 0.0  ;;  %v151_v38 = vadd.f32 %v625_v8, %v150_v35  ;;  %196 = vadd.xlane.f32.xlu1 %v195_v36 }
  0xec   :  { %v169_v40 = vmax.f32 %v159_v34, 0.0  ;;  %190 = vadd.xlane.f32.xlu0 %v189_v39  ;;  %v183_v41 = vmul.f32 %v636_v14, %v168_v33  ;;  %v757_v33 = vmov 0.0  }
  0xed   :  { %v167_v42 = vmax.f32 %v151_v38, 0.0  ;;  %v181_v45 = vmul.f32 %v636_v14, %v166_v37  ;;  %675 = vmatprep.subr.bf16.mxu1 %v757_v33  ;;  %693 = vmatprep.subr.bf16.mxu0 %v757_v33  ;;  %v759_v37 = vmov 1966171168  }
  0xee   :  { %v204_v43 = vsel %vm185_vm1, %v183_v41, 0.0  ;;  %v184_v44 = vmul.f32 %v636_v14, %v169_v40  ;;  %676 = vmatpush3.bf16.msra.mxu1 %v818_v3  ;;  %694 = vmatpush3.bf16.msra.mxu0 %v839_v6  ;;  %v301_v38 = vunpack.c.l.s4 %v759_v37 }
  0xef   :  { %v182_v47 = vmul.f32 %v636_v14, %v167_v42  ;;  %v198_v48 = vsel %vm185_vm1, %v181_v45, 0.0  ;;  %681 = vmatprep.subr.bf16.mxu1 %v757_v33  ;;  %677 = vmatprep.mubr.msk.bf16.mxu1 %vm758_vm8, %v757_v33 }
  0xf0   :  { %205 = vadd.xlane.f32.xlu0 %v204_v43  ;;  %v207_v46 = vsel %vm185_vm1, %v184_v44, 0.0  ;;  %695 = vmatprep.mubr.msk.bf16.mxu0 %vm758_vm8, %v757_v33  ;;  %v302_v39 = vunpack.c.0.s8 %v301_v38 }
  0xf1   :  { %208 = vadd.xlane.f32.xlu1 %v207_v46  ;;  %v201_v49 = vsel %vm185_vm1, %v182_v47, 0.0 }
  0xf2   :  { %v305_v40 = vsub.s32 %v302_v39, %v244_v60 }
  0xf4   :  { %199 = vadd.xlane.f32.xlu0 %v198_v48 }
  0xf5   :  { %202 = vadd.xlane.f32.xlu1 %v201_v49 }
 0x106   :  { %232 = vperm.xlu1 %713, %v228_v50  }
 0x10a   :  { %217 = vperm.xlu0 %712, %v637_v51   ;;  %v721_v51 = vld [vmem:[%s913_s6 + $0x8] sm:$0xff]  }
 0x174   :  { %v194_v53 = vpop.xlane.xlu1 %193 }
 0x175   :  { %v188_v52 = vpop.xlane.xlu0 %187 }
 0x178   :  { %v197_v56 = vpop.xlane.xlu1 %196 }
 0x179   :  { %v191_v54 = vpop.xlane.xlu0 %190 }
 0x17d   :  { %v206_v57 = vpop.xlane.xlu0 %205 }
 0x17e   :  { %v209_v59 = vpop.xlane.xlu1 %208 }
 0x181   :  { %v200_v62 = vpop.xlane.xlu0 %199 }
 0x182   :  { %v203_v63 = vpop.xlane.xlu1 %202 }
 0x186   :  { %v233_v15 = vpop.permute.xlu1 %232 }
 0x187   :  { %vm234_vm6 = vcmp.lt.s32.totalorder %v230_v58, %v233_v15 }
 0x189   :  { %v218_v2 = vpop.permute.xlu0 %217 }
 0x18a   :  { %v220_v7 = vadd.f32 %v218_v2, %v188_v52  ;;  %v221_v8 = vadd.f32 %v218_v2, %v191_v54  ;;  %v222_v9 = vadd.f32 %v218_v2, %v194_v53  ;;  %v223_v10 = vadd.f32 %v218_v2, %v197_v56 }
 0x18b   :  { %v224_v11 = vadd.f32 %v218_v2, %v200_v62  ;;  %v225_v12 = vadd.f32 %v218_v2, %v203_v63  ;;  %v226_v13 = vadd.f32 %v218_v2, %v206_v57  ;;  %v227_v14 = vadd.f32 %v218_v2, %v209_v59 }
 0x18c   :  { %v246_v16 = vrot.slane %v220_v7, %v245_v0  ;;  %v251_v17 = vrot.slane %v221_v8, %v250_v1  ;;  %v257_v18 = vrot.slane %v222_v9, %v245_v0  ;;  %v261_v19 = vrot.slane %v223_v10, %v250_v1 }
 0x18d   :  { %v266_v20 = vrot.slane %v224_v11, %v245_v0  ;;  %v270_v21 = vrot.slane %v225_v12, %v250_v1  ;;  %v275_v22 = vrot.slane %v226_v13, %v245_v0  ;;  %v279_v23 = vrot.slane %v227_v14, %v250_v1 }
 0x18e   :  { %v253_v24 = vsel %vm252_vm2, %v251_v17, %v246_v16  ;;  %v262_v25 = vsel %vm252_vm2, %v261_v19, %v257_v18 }
 0x18f   :  { %v271_v26 = vsel %vm252_vm2, %v270_v21, %v266_v20  ;;  %v282_v27 = vsel %vm281_vm3, %v262_v25, %v253_v24  ;;  %v280_v28 = vsel %vm252_vm2, %v279_v23, %v275_v22 }
 0x190   :  { %v284_v29 = vsel %vm283_vm4, %v271_v26, %v282_v27 }
 0x191   :  { %v286_v30 = vsel %vm285_vm5, %v280_v28, %v284_v29 }
 0x192   :  { %v288_v31 = vsel %vm234_vm6, %v286_v30, -3e+38 }
 0x193   :  { %v290_v32 = vsel %vm289_vm7, %v288_v31, -inf }
 0x194   :  { %291 = vmax.xlane.f32.xlu1 %v290_v32 }
 0x221   :  { %v292_v34 = vpop.xlane.xlu1 %291 }
 0x222   :  { %v293_v35 = vsub.f32 %v288_v31, %v292_v34  ;;  %v642_v34 = vld [vmem:[%s914_s7] ss:$0 sm:$0xff] }
 0x224   :  { %v294_v36 = vmul.f32 1.442695, %v293_v35 }
 0x226   :  { %722 = vpow2.f32 %v294_v36 }
 0x230   :  { %v723_v41 = vpop.eup %722 }
 0x231   :  { %v296_v42 = vsel %vm289_vm7, %v723_v41, 0.0  ;;  %v306_v3 = vrot.slane %v723_v41, %v305_v40 }
 0x232   :  { %297 = vadd.xlane.f32.xlu0 %v296_v42 }
 0x233   :  { %v307_v6 = vcombine.high %v306_v3, %v306_v3  ;;  %v314_v43 = vrot.slane %v306_v3, %v305_v40 }
 0x235   :  { %v321_v44 = vrot.slane %v307_v6, %v305_v40  ;;  %v328_v45 = vpack.c.bf16 %v314_v43, %v314_v43  ;;  %v322_v49 = vcombine.high %v314_v43, %v314_v43 }
 0x237   :  { %v323_v46 = vcombine.high %v321_v44, %v321_v44  ;;  %678 = vmatmul.mubr.msk.bf16.vlgmr.msra.gmra.mrb[0].mxu1 %vm185_vm1, %v328_v45  ;;  %v329_v48 = vpack.c.bf16 %v321_v44, %v321_v44  ;;  %v330_v50 = vpack.c.bf16 %v322_v49, %v322_v49 }
 0x238   :  { %682 = vmatpush3.bf16.msra.mxu1 %v825_v4  ;;  %683 = vmatprep.mubr.msk.bf16.mxu1 %vm758_vm8, %v757_v33  ;;  %v720_v4 = vld [vmem:[%s913_s6] sm:$0xff]  }
 0x239   :  { %v331_v47 = vpack.c.bf16 %v323_v46, %v323_v46  ;;  %687 = vmatprep.subr.bf16.mxu1 %v757_v33 }
 0x23b   :  { %696 = vmatmul.mubr.msk.bf16.vlgmr.msra.gmra.mrb[8].mxu0 %vm185_vm1, %v331_v47 }
 0x23f   :  { %684 = vmatmul.mubr.msk.bf16.vlgmr.msra.gmra.mrb[4].mxu1 %vm185_vm1, %v329_v48 }
 0x240   :  { %688 = vmatpush3.bf16.msra.mxu1 %v830_v5  ;;  %689 = vmatprep.mubr.msk.bf16.mxu1 %vm758_vm8, %v757_v33 }
 0x241   :  { %699 = vmatprep.subr.bf16.mxu1 %v757_v33 }
 0x247   :  { %690 = vmatmul.mubr.msk.bf16.vlgmr.msra.gmra.mrb[8].mxu1 %vm185_vm1, %v330_v50 }
 0x248   :  { %703 = vmatprep.mubr.msk.bf16.mxu1 %vm758_vm8, %v757_v33  ;;  %700 = vmatpush3.bf16.msra.mxu1 %v720_v4 }
 0x249   :  { %701 = vmatprep.subr.bf16.mxu1 %v757_v33 }
 0x24c   :  { %702 = vmatpush3.bf16.msra.mxu1 %v721_v51 }
 0x2bf   :  { %v298_v5 = vpop.xlane.xlu0 %297 }
 0x2c0   :  { %v509_v52 = vrot.slane %v298_v5, 1  ;;  %724 = vrcp.f32 %v298_v5  ;;  %v511_v53 = vrot.slane %v298_v5, 3  ;;  %v510_v56 = vrot.slane %v298_v5, 2 }
 0x2c2   :  { %726 = vrcp.f32 %v509_v52 }
 0x2c3   :  { %728 = vrcp.f32 %v511_v53 }
 0x2c4   :  { %730 = vrcp.f32 %v510_v56 }
 0x2ca   :  { %v725_v61 = vpop.eup %724 }
 0x2cc   :  { %v727_v1 = vpop.eup %726 }
 0x2cd   :  { %v729_v10 = vpop.eup %728 }
 0x2ce   :  { %v731_v18 = vpop.eup %730 }
 0x30a   :  { %v370_v54 = vpop.f32.mrb[0].mxu1 }
 0x30b   :  { %v679_v55 = vpop.f32.mrb[1].mxu1  ;;  %v517_v63 = vmul.f32 %v725_v61, %v370_v54 }
 0x30c   :  { %v373_v57 = vpop.f32.mrb[2].mxu1 }
 0x30d   :  { %v680_v58 = vpop.f32.mrb[3].mxu1  ;;  %v524_v11 = vpack.c.bf16 %v517_v63, %v517_v63 }
 0x30e   :  { %v502_v59 = vpop.f32.mrb[8].mxu0 }
 0x30f   :  { %v697_v60 = vpop.f32.mrb[9].mxu0  ;;  %v523_v14 = vmul.f32 %v729_v10, %v502_v59  ;;  %v543_v16 = vunpack.c.l.b16 %v524_v11 }
 0x310   :  { %v505_v62 = vpop.f32.mrb[10].mxu0 }
 0x311   :  { %v698_v0 = vpop.f32.mrb[11].mxu0  ;;  %v527_v19 = vpack.c.bf16 %v523_v14, %v523_v14 }
 0x312   :  { %v414_v2 = vpop.f32.mrb[4].mxu1 }
 0x313   :  { %v519_v7 = vmul.f32 %v727_v1, %v414_v2  ;;  %v685_v8 = vpop.f32.mrb[5].mxu1  ;;  %v546_v27 = vunpack.c.l.b16 %v527_v19 }
 0x314   :  { %v417_v9 = vpop.f32.mrb[6].mxu1 }
 0x315   :  { %v525_v12 = vpack.c.bf16 %v519_v7, %v519_v7  ;;  %v686_v13 = vpop.f32.mrb[7].mxu1  ;;  %v551_v30 = vrot.slane %v546_v27, 5 }
 0x317   :  { %v544_v15 = vunpack.c.l.b16 %v525_v12 }
 0x319   :  { %v547_v17 = vrot.slane %v544_v15, 7 }
 0x31a   :  { %v458_v20 = vpop.f32.mrb[8].mxu1 }
 0x31b   :  { %v548_v21 = vsel %vm281_vm3, %v547_v17, %v543_v16  ;;  %v521_v22 = vmul.f32 %v731_v18, %v458_v20  ;;  %v691_v23 = vpop.f32.mrb[9].mxu1 }
 0x31c   :  { %v461_v24 = vpop.f32.mrb[10].mxu1 }
 0x31d   :  { %v526_v25 = vpack.c.bf16 %v521_v22, %v521_v22  ;;  %v692_v26 = vpop.f32.mrb[11].mxu1 }
 0x31f   :  { %v545_v28 = vunpack.c.l.b16 %v526_v25 }
 0x321   :  { %v549_v29 = vrot.slane %v545_v28, 6 }
 0x323   :  { %v550_v31 = vsel %vm283_vm4, %v549_v29, %v548_v21 }
 0x324   :  { %v552_v32 = vsel %vm285_vm5, %v551_v30, %v550_v31 }
 0x325   :  { %v553_v33 = vpack.c.b16 %v552_v32, %v552_v32 }
 0x327   :  { %704 = vmatmul.mubr.msk.bf16.vlgmr.msra.gmra.mrb[12].mxu1 %vm84_vm0, %v553_v33 }
 0x3fa   :  { %v603_v35 = vpop.f32.mrb[12].mxu1 }
 0x3fb   :  { %v604_v36 = vadd.f32 %v642_v34, %v603_v35  ;;  %v705_v37 = vpop.f32.mrb[13].mxu1 }
 0x3fc   :  { %v606_v38 = vpop.f32.mrb[14].mxu1 }
 0x3fd   :  { %v706_v39 = vpop.f32.mrb[15].mxu1  ;;  %610 = vst.msk [vmem:[#allocation3] sm:$0xf] %vm609_vm9, %v604_v36 }
 0x3fe   :  { %743 = shalt.err (!%p740_p4)
}
 0x3ff   :  { %s744_s7 = scalar_lea.hbm %s915_s8, 64 }
 0x400   :  { %p745_p5 = scmp.ne.s32.totalorder %s915_s8, %s744_s7  ;;  %p748_p6 = scmp.lt.u32.totalorder %s744_s7, %s915_s8 }
 0x402   :  { %p750_p7 = pnand %p748_p6, %p745_p5 }
 0x404   :  { %753 = shalt.err (!%p750_p7)
}
 0x405   :  { %620 = dma.vmem_to_hbm [thread:$0]  %s618_s25, 64, %s915_s8, [#allocation4]  }
 0x406   :  { %754 = dma.done.wait [#allocation4], 64  }
 0x407   :  { %755 = vsyncadd [#allocation4], 4294967232 }
 0x408   :  { %624 = vsyncpa [#allocation4], 1 }

</bundles_post_ra>
